<compile_context>
chip_gen: v5e
topology: v5e:2x2
jax: 0.10.0
libtpu: 0.0.40
codegen_flags: <defaults>
</compile_context>

<pallas_src>
from functools import partial

import jax
import jax.numpy as jnp
from jax.experimental import pallas as pl
from jax.experimental.pallas import tpu as pltpu

_NEG_INF = -1e30  # masks padded vocab lanes out of the softmax (exact in f32)


def ngram_kernel(x_ref, w1_ref, b1_ref, w2_ref, b2_ref, out_ref,
                 h_scr, m_scr, l_scr):
    # x_ref : (bm, C*E)  bf16      w1_ref: (C*E, 128) bf16    b1_ref: (1, 128) f32
    # w2_ref: (128, tn)  bf16      b2_ref: (1, tn)    f32 (padded lanes = -1e30)
    # out_ref: (bm, tn)  out_dtype log-probabilities for this vocab tile
    # h_scr : (bm, 128) bf16   m_scr/l_scr: (bm, 1) f32  (online LSE state)
    p = pl.program_id(1)   # 0: LSE accumulation sweep, 1: store sweep
    n = pl.program_id(2)   # vocab tile index within the sweep

    # Compute h = relu(x @ w1 + b1) once per batch tile; init online-LSE state.
    @pl.when(jnp.logical_and(p == 0, n == 0))
    def _():
        h = jnp.dot(x_ref[...], w1_ref[...],
                    preferred_element_type=jnp.float32) + b1_ref[...]
        h_scr[...] = jnp.maximum(h, 0.0).astype(jnp.bfloat16)
        m_scr[...] = jnp.full(m_scr.shape, -jnp.inf, m_scr.dtype)
        l_scr[...] = jnp.zeros(l_scr.shape, l_scr.dtype)

    # Per-tile logits (MXU: bf16 in / f32 acc) + bias (f32).
    logits = jnp.dot(h_scr[...], w2_ref[...],
                     preferred_element_type=jnp.float32) + b2_ref[...]

    # Pass 1: online max / sum-exp across vocab tiles (f32 on VPU/EUP).
    @pl.when(p == 0)
    def _():
        m_new = jnp.maximum(m_scr[...], jnp.max(logits, axis=1, keepdims=True))
        l_scr[...] = (l_scr[...] * jnp.exp(m_scr[...] - m_new)
                      + jnp.sum(jnp.exp(logits - m_new), axis=1, keepdims=True))
        m_scr[...] = m_new

    # Pass 2: final log-softmax with the converged LSE; lane-dense store.
    @pl.when(p == 1)
    def _():
        lse = m_scr[...] + jnp.log(l_scr[...])
        out_ref[...] = (logits - lse).astype(out_ref.dtype)


def _round_up(x, m):
    return (x + m - 1) // m * m


@partial(jax.jit, static_argnames=("out_dtype", "tn_max"))
def ngram_forward(indices, embed_table, w1, b1, w2, b2,
                  out_dtype=jnp.float32, tn_max=2048):
    """Forward of NGramLanguageModeler.

    indices:     (context,) int32           -> returns (1, vocab)  [module semantics]
                 or (batch, context) int32  -> returns (batch, vocab)
    embed_table: (vocab, embed_dim) f32
    w1: (context*embed_dim, 128) f32,  b1: (1, 128) f32
    w2: (128, vocab) f32,              b2: (1, vocab) f32
    """
    idx = indices[None, :] if indices.ndim == 1 else indices
    B, C = idx.shape
    V, E = embed_table.shape
    H = w1.shape[1]
    K = C * E

    # Glue: embedding gather + flatten (pure indexing/reshape), bf16 for MXU.
    # TODO(synk): fuse this gather into the kernel via scalar-prefetched idx.
    x = embed_table[idx].reshape(B, K).astype(jnp.bfloat16)

    # --- batch (M) tiling: multiples of 16 (bf16 sublane packing), capped at
    # 256 (v6e/v7x MXU M); >=2 tiles when B>16 so both v7x TCs get work.
    if B <= 16:
        bm = _round_up(B, 16)
    else:
        bm = min(256, _round_up((B + 1) // 2, 16))
    Bp = _round_up(B, bm)
    if Bp != B:
        x = jnp.pad(x, ((0, Bp - B), (0, 0)))

    # --- vocab (N) tiling: lane-dense 128-multiples, capped so the bf16 w2
    # tile + f32 logits tile stay well inside VMEM on every generation.
    tn = min(_round_up(V, 128), tn_max)
    Vp = _round_up(V, tn)
    n_tiles = Vp // tn

    w1_b = w1.astype(jnp.bfloat16)
    b1_r = b1.reshape(1, H).astype(jnp.float32)
    w2_p = jnp.zeros((H, Vp), jnp.bfloat16).at[:, :V].set(w2.astype(jnp.bfloat16))
    b2_p = jnp.full((1, Vp), _NEG_INF, jnp.float32).at[:, :V].set(
        b2.reshape(1, V).astype(jnp.float32))

    # Per-generation VMEM limit: ~3/4 of capacity, capped at 100 MiB
    # (v5e/v6e: 96 MiB; v7x 64 MiB per TC -> 48 MiB).
    try:
        vmem_cap = int(pltpu.get_tpu_info().vmem_capacity_bytes)
    except Exception:
        vmem_cap = 64 * 1024 * 1024
    vmem_limit = min(vmem_cap * 3 // 4, 100 * 1024 * 1024)

    # Grid: (batch tiles, pass, vocab tiles). Pass 0 accumulates the LSE,
    # pass 1 stores; during pass 0 the output block index stays pinned at
    # (i, 0) (via p*n) so no garbage block is ever written back.
    grid = (Bp // bm, 2, n_tiles)

    grid_spec = pltpu.PrefetchScalarGridSpec(
        num_scalar_prefetch=0,
        grid=grid,
        in_specs=[
            pl.BlockSpec((bm, K), lambda i, p, n: (i, 0)),   # x (resident per i)
            pl.BlockSpec((K, H), lambda i, p, n: (0, 0)),    # w1 (grid-invariant)
            pl.BlockSpec((1, H), lambda i, p, n: (0, 0)),    # b1 (grid-invariant)
            pl.BlockSpec((H, tn), lambda i, p, n: (0, n)),   # w2 vocab tile
            pl.BlockSpec((1, tn), lambda i, p, n: (0, n)),   # b2 vocab tile
        ],
        out_specs=pl.BlockSpec((bm, tn), lambda i, p, n: (i, p * n)),
        scratch_shapes=[
            pltpu.VMEM((bm, H), jnp.bfloat16),   # cached relu(x@w1+b1)
            pltpu.VMEM((bm, 1), jnp.float32),    # running max
            pltpu.VMEM((bm, 1), jnp.float32),    # running sum-exp
        ],
    )

    out_bytes = jnp.dtype(out_dtype).itemsize
    cost = pl.CostEstimate(
        flops=2 * Bp * K * H + 2 * 2 * Bp * H * Vp,          # linear1 + 2x linear2
        transcendentals=Bp * Vp + Bp,                        # exp sweep + log
        bytes_accessed=(Bp * K * 2 + K * H * 2 + 2 * H * Vp * 2
                        + (H + Vp) * 4 + Bp * Vp * out_bytes),
    )

    out = pl.pallas_call(
        ngram_kernel,
        out_shape=jax.ShapeDtypeStruct((Bp, Vp), out_dtype),
        grid_spec=grid_spec,
        compiler_params=pltpu.CompilerParams(
            dimension_semantics=("parallel", "arbitrary", "arbitrary"),
            vmem_limit_bytes=vmem_limit,
        ),
        cost_estimate=cost,
    )(x, w1_b, b1_r, w2_p, b2_p)

    return out[:B, :V]


if __name__ == "__main__":
    # Small, module-consistent shapes.
    vocab_size = 16
    embedding_dim = 8
    context_size = 4
    hidden = 128  # fixed by the module definition

    keys = jax.random.split(jax.random.PRNGKey(0), 12)

    # Deterministic init mimicking PyTorch defaults:
    #   Embedding ~ N(0,1); Linear ~ U(-1/sqrt(fan_in), 1/sqrt(fan_in)).
    embed_table = jax.random.normal(keys[0], (vocab_size, embedding_dim), jnp.float32)

    in1 = context_size * embedding_dim
    bound1 = 1.0 / float(in1) ** 0.5
    w1 = jax.random.uniform(keys[1], (in1, hidden), jnp.float32, -bound1, bound1)
    b1 = jax.random.uniform(keys[2], (1, hidden), jnp.float32, -bound1, bound1)

    bound2 = 1.0 / float(hidden) ** 0.5
    w2 = jax.random.uniform(keys[3], (hidden, vocab_size), jnp.float32, -bound2, bound2)
    b2 = jax.random.uniform(keys[4], (1, vocab_size), jnp.float32, -bound2, bound2)

    # Single context (module semantics) and a small batch of contexts.
    indices_1 = jax.random.randint(keys[5], (context_size,), 0, vocab_size, jnp.int32)
    indices_b = jax.random.randint(keys[6], (40, context_size), 0, vocab_size, jnp.int32)

    def reference(idx, et, w1_, b1_, w2_, b2_):
        idx2 = idx[None, :] if idx.ndim == 1 else idx
        xr = et[idx2].reshape(idx2.shape[0], -1).astype(jnp.bfloat16)
        h = jnp.dot(xr, w1_.astype(jnp.bfloat16),
                    preferred_element_type=jnp.float32) + b1_
        h = jnp.maximum(h, 0.0)
        logits = jnp.dot(h.astype(jnp.bfloat16), w2_.astype(jnp.bfloat16),
                         preferred_element_type=jnp.float32) + b2_
        return jax.nn.log_softmax(logits, axis=1)

    lp1 = ngram_forward(indices_1, embed_table, w1, b1, w2, b2)
    lpb = ngram_forward(indices_b, embed_table, w1, b1, w2, b2)
    jax.block_until_ready((lp1, lpb))

    assert lp1.shape == (1, vocab_size), lp1.shape
    assert lpb.shape == (40, vocab_size), lpb.shape
    # Rows must normalize to 1 in prob space.
    assert abs(float(jnp.sum(jnp.exp(lp1))) - 1.0) < 1e-4
    assert float(jnp.max(jnp.abs(jnp.sum(jnp.exp(lpb), axis=1) - 1.0))) < 1e-4
    # Match a pure-JAX reference using the same bf16-in / f32-acc arithmetic.
    ref1 = reference(indices_1, embed_table, w1, b1, w2, b2)
    refb = reference(indices_b, embed_table, w1, b1, w2, b2)
    assert jnp.allclose(lp1, ref1, atol=1e-2), float(jnp.max(jnp.abs(lp1 - ref1)))
    assert jnp.allclose(lpb, refb, atol=1e-2), float(jnp.max(jnp.abs(lpb - refb)))

    # --- exercise the tiled-vocab (multi N-tile) + multi batch-tile path.
    vocab2 = 300
    embed2 = jax.random.normal(keys[7], (vocab2, embedding_dim), jnp.float32)
    w2b = jax.random.uniform(keys[8], (hidden, vocab2), jnp.float32, -bound2, bound2)
    b2b = jax.random.uniform(keys[9], (1, vocab2), jnp.float32, -bound2, bound2)
    idx2 = jax.random.randint(keys[10], (24, context_size), 0, vocab2, jnp.int32)

    lp2 = ngram_forward(idx2, embed2, w1, b1, w2b, b2b, tn_max=128)  # 3 vocab tiles
    jax.block_until_ready(lp2)
    assert lp2.shape == (24, vocab2), lp2.shape
    assert float(jnp.max(jnp.abs(jnp.sum(jnp.exp(lp2), axis=1) - 1.0))) < 1e-4
    ref2 = reference(idx2, embed2, w1, b1, w2b, b2b)
    assert jnp.allclose(lp2, ref2, atol=1e-2), float(jnp.max(jnp.abs(lp2 - ref2)))

    # --- optional bf16 output (halves HBM writeback at large vocab).
    lpb16 = ngram_forward(indices_b, embed_table, w1, b1, w2, b2,
                          out_dtype=jnp.bfloat16)
    jax.block_until_ready(lpb16)
    assert lpb16.dtype == jnp.bfloat16 and lpb16.shape == (40, vocab_size)
    assert float(jnp.max(jnp.abs(
        jnp.sum(jnp.exp(lpb16.astype(jnp.float32)), axis=1) - 1.0))) < 2e-2

    print("KERNEL_OK")
</pallas_src>

<mosaic_0001>
module attributes {stable_mosaic.version = 11 : i64} {
  func.func @ngram_kernel(%arg0: i32, %arg1: i32, %arg2: i32, %arg3: memref<16x32xbf16, #tpu.memory_space<vmem>>, %arg4: memref<32x128xbf16, #tpu.memory_space<vmem>>, %arg5: memref<1x128xf32, #tpu.memory_space<vmem>>, %arg6: memref<128x128xbf16, #tpu.memory_space<vmem>>, %arg7: memref<1x128xf32, #tpu.memory_space<vmem>>, %arg8: memref<16x128xf32, #tpu.memory_space<vmem>>, %arg9: memref<16x128xbf16, #tpu.memory_space<vmem>>, %arg10: memref<16x1xf32, #tpu.memory_space<vmem>>, %arg11: memref<16x1xf32, #tpu.memory_space<vmem>>) attributes {dimension_semantics = [#tpu.dimension_semantics<parallel>, #tpu.dimension_semantics<arbitrary>, #tpu.dimension_semantics<arbitrary>], iteration_bounds = array<i64: 1, 2, 1>, scalar_prefetch = 0 : i64, scratch_operands = 3 : i64, tpu.core_type = #tpu.core_type<tc>, window_params = [{transform_indices = @transform_0, window_bounds = array<i64: 16, 32>}, {pipeline_mode = #tpu.pipeline_mode<synchronous>, transform_indices = @transform_1, window_bounds = array<i64: 32, 128>}, {pipeline_mode = #tpu.pipeline_mode<synchronous>, transform_indices = @transform_2, window_bounds = array<i64: 1, 128>}, {transform_indices = @transform_3, window_bounds = array<i64: 128, 128>}, {transform_indices = @transform_4, window_bounds = array<i64: 1, 128>}, {transform_indices = @transform_5, window_bounds = array<i64: 16, 128>}]} {
    %c0_i32 = arith.constant 0 : i32
    %0 = arith.cmpi eq, %arg1, %c0_i32 : i32
    %c0_i32_0 = arith.constant 0 : i32
    %1 = arith.cmpi eq, %arg2, %c0_i32_0 : i32
    %2 = arith.andi %0, %1 : i1
    %3 = arith.extui %2 : i1 to i32
    %c0_i32_1 = arith.constant 0 : i32
    %4 = arith.cmpi ne, %3, %c0_i32_1 : i32
    scf.if %4 {
      %c0_10 = arith.constant 0 : index
      %c0_11 = arith.constant 0 : index
      %17 = vector.load %arg3[%c0_10, %c0_11] : memref<16x32xbf16, #tpu.memory_space<vmem>>, vector<16x32xbf16>
      %c0_12 = arith.constant 0 : index
      %c0_13 = arith.constant 0 : index
      %18 = vector.load %arg4[%c0_12, %c0_13] : memref<32x128xbf16, #tpu.memory_space<vmem>>, vector<32x128xbf16>
      %cst_14 = arith.constant dense<0.000000e+00> : vector<16x128xf32>
      %19 = tpu.matmul %17, %18, %cst_14 {dimension_numbers = #tpu.dot_dimension_numbers<[1], [0], [0], [1], [0, 0, 1, 1], [], []>} : vector<16x32xbf16>, vector<32x128xbf16>, vector<16x128xf32> -> vector<16x128xf32>
      %c0_15 = arith.constant 0 : index
      %c0_16 = arith.constant 0 : index
      %20 = vector.load %arg5[%c0_15, %c0_16] : memref<1x128xf32, #tpu.memory_space<vmem>>, vector<1x128xf32>
      %21 = vector.broadcast %20 : vector<1x128xf32> to vector<16x128xf32>
      %22 = arith.addf %19, %21 : vector<16x128xf32>
      %cst_17 = arith.constant 0.000000e+00 : f32
      %23 = vector.broadcast %cst_17 : f32 to vector<16x128xf32>
      %24 = arith.maximumf %22, %23 : vector<16x128xf32>
      %25 = arith.truncf %24 : vector<16x128xf32> to vector<16x128xbf16>
      %c0_18 = arith.constant 0 : index
      %c0_19 = arith.constant 0 : index
      %26 = vector.load %arg9[%c0_18, %c0_19] : memref<16x128xbf16, #tpu.memory_space<vmem>>, vector<16x128xbf16>
      tpu.vector_store %arg9[%c0_18, %c0_19], %25 {strides = array<i32>} : memref<16x128xbf16, #tpu.memory_space<vmem>>, vector<16x128xbf16>,
      %cst_20 = arith.constant 0xFF800000 : f32
      %27 = vector.broadcast %cst_20 : f32 to vector<16x1xf32>
      %c0_21 = arith.constant 0 : index
      %c0_22 = arith.constant 0 : index
      %28 = vector.load %arg10[%c0_21, %c0_22] : memref<16x1xf32, #tpu.memory_space<vmem>>, vector<16x1xf32>
      tpu.vector_store %arg10[%c0_21, %c0_22], %27 {strides = array<i32>} : memref<16x1xf32, #tpu.memory_space<vmem>>, vector<16x1xf32>,
      %cst_23 = arith.constant 0.000000e+00 : f32
      %29 = vector.broadcast %cst_23 : f32 to vector<16x1xf32>
      %c0_24 = arith.constant 0 : index
      %c0_25 = arith.constant 0 : index
      %30 = vector.load %arg11[%c0_24, %c0_25] : memref<16x1xf32, #tpu.memory_space<vmem>>, vector<16x1xf32>
      tpu.vector_store %arg11[%c0_24, %c0_25], %29 {strides = array<i32>} : memref<16x1xf32, #tpu.memory_space<vmem>>, vector<16x1xf32>,
    } else {
    }
    %c0 = arith.constant 0 : index
    %c0_2 = arith.constant 0 : index
    %5 = vector.load %arg9[%c0, %c0_2] : memref<16x128xbf16, #tpu.memory_space<vmem>>, vector<16x128xbf16>
    %c0_3 = arith.constant 0 : index
    %c0_4 = arith.constant 0 : index
    %6 = vector.load %arg6[%c0_3, %c0_4] : memref<128x128xbf16, #tpu.memory_space<vmem>>, vector<128x128xbf16>
    %cst = arith.constant dense<0.000000e+00> : vector<16x128xf32>
    %7 = tpu.matmul %5, %6, %cst {dimension_numbers = #tpu.dot_dimension_numbers<[1], [0], [0], [1], [0, 0, 1, 1], [], []>} : vector<16x128xbf16>, vector<128x128xbf16>, vector<16x128xf32> -> vector<16x128xf32>
    %c0_5 = arith.constant 0 : index
    %c0_6 = arith.constant 0 : index
    %8 = vector.load %arg7[%c0_5, %c0_6] : memref<1x128xf32, #tpu.memory_space<vmem>>, vector<1x128xf32>
    %9 = vector.broadcast %8 : vector<1x128xf32> to vector<16x128xf32>
    %10 = arith.addf %7, %9 : vector<16x128xf32>
    %c0_i32_7 = arith.constant 0 : i32
    %11 = arith.cmpi eq, %arg1, %c0_i32_7 : i32
    %12 = arith.extui %11 : i1 to i32
    %c0_i32_8 = arith.constant 0 : i32
    %13 = arith.cmpi ne, %12, %c0_i32_8 : i32
    scf.if %13 {
      %c0_10 = arith.constant 0 : index
      %c0_11 = arith.constant 0 : index
      %17 = vector.load %arg10[%c0_10, %c0_11] : memref<16x1xf32, #tpu.memory_space<vmem>>, vector<16x1xf32>
      %cst_12 = arith.constant dense<0xFF800000> : vector<16xf32>
      %18 = vector.multi_reduction <maximumf>, %10, %cst_12 [1] : vector<16x128xf32> to vector<16xf32>
      %19 = vector.shape_cast %18 : vector<16xf32> to vector<16x1xf32>
      %20 = arith.maximumf %17, %19 : vector<16x1xf32>
      %c0_13 = arith.constant 0 : index
      %c0_14 = arith.constant 0 : index
      %21 = vector.load %arg11[%c0_13, %c0_14] : memref<16x1xf32, #tpu.memory_space<vmem>>, vector<16x1xf32>
      %c0_15 = arith.constant 0 : index
      %c0_16 = arith.constant 0 : index
      %22 = vector.load %arg10[%c0_15, %c0_16] : memref<16x1xf32, #tpu.memory_space<vmem>>, vector<16x1xf32>
      %23 = arith.subf %22, %20 : vector<16x1xf32>
      %24 = math.exp %23 : vector<16x1xf32>
      %25 = arith.mulf %21, %24 : vector<16x1xf32>
      %26 = vector.broadcast %20 : vector<16x1xf32> to vector<16x128xf32>
      %27 = arith.subf %10, %26 : vector<16x128xf32>
      %28 = math.exp %27 : vector<16x128xf32>
      %cst_17 = arith.constant dense<0.000000e+00> : vector<16xf32>
      %29 = vector.multi_reduction <add>, %28, %cst_17 [1] : vector<16x128xf32> to vector<16xf32>
      %30 = vector.shape_cast %29 : vector<16xf32> to vector<16x1xf32>
      %31 = arith.addf %25, %30 : vector<16x1xf32>
      %c0_18 = arith.constant 0 : index
      %c0_19 = arith.constant 0 : index
      %32 = vector.load %arg11[%c0_18, %c0_19] : memref<16x1xf32, #tpu.memory_space<vmem>>, vector<16x1xf32>
      tpu.vector_store %arg11[%c0_18, %c0_19], %31 {strides = array<i32>} : memref<16x1xf32, #tpu.memory_space<vmem>>, vector<16x1xf32>,
      %c0_20 = arith.constant 0 : index
      %c0_21 = arith.constant 0 : index
      %33 = vector.load %arg10[%c0_20, %c0_21] : memref<16x1xf32, #tpu.memory_space<vmem>>, vector<16x1xf32>
      tpu.vector_store %arg10[%c0_20, %c0_21], %20 {strides = array<i32>} : memref<16x1xf32, #tpu.memory_space<vmem>>, vector<16x1xf32>,
    } else {
    }
    %c1_i32 = arith.constant 1 : i32
    %14 = arith.cmpi eq, %arg1, %c1_i32 : i32
    %15 = arith.extui %14 : i1 to i32
    %c0_i32_9 = arith.constant 0 : i32
    %16 = arith.cmpi ne, %15, %c0_i32_9 : i32
    scf.if %16 {
      %c0_10 = arith.constant 0 : index
      %c0_11 = arith.constant 0 : index
      %17 = vector.load %arg10[%c0_10, %c0_11] : memref<16x1xf32, #tpu.memory_space<vmem>>, vector<16x1xf32>
      %c0_12 = arith.constant 0 : index
      %c0_13 = arith.constant 0 : index
      %18 = vector.load %arg11[%c0_12, %c0_13] : memref<16x1xf32, #tpu.memory_space<vmem>>, vector<16x1xf32>
      %19 = math.log %18 : vector<16x1xf32>
      %20 = arith.addf %17, %19 : vector<16x1xf32>
      %21 = vector.broadcast %20 : vector<16x1xf32> to vector<16x128xf32>
      %22 = arith.subf %10, %21 : vector<16x128xf32>
      %c0_14 = arith.constant 0 : index
      %c0_15 = arith.constant 0 : index
      %23 = vector.load %arg8[%c0_14, %c0_15] : memref<16x128xf32, #tpu.memory_space<vmem>>, vector<16x128xf32>
      tpu.vector_store %arg8[%c0_14, %c0_15], %22 {strides = array<i32>} : memref<16x128xf32, #tpu.memory_space<vmem>>, vector<16x128xf32>,
    } else {
    }
    return
  }
  func.func @transform_0(%arg0: i32, %arg1: i32, %arg2: i32) -> (i32, i32) {
    %c0_i32 = arith.constant 0 : i32
    %c0_i32_0 = arith.constant 0 : i32
    return %arg0, %c0_i32 : i32, i32
  }
  func.func @transform_1(%arg0: i32, %arg1: i32, %arg2: i32) -> (i32, i32) {
    %c0_i32 = arith.constant 0 : i32
    %c0_i32_0 = arith.constant 0 : i32
    %c0_i32_1 = arith.constant 0 : i32
    return %c0_i32, %c0_i32_0 : i32, i32
  }
  func.func @transform_2(%arg0: i32, %arg1: i32, %arg2: i32) -> (i32, i32) {
    %c0_i32 = arith.constant 0 : i32
    %c0_i32_0 = arith.constant 0 : i32
    %c0_i32_1 = arith.constant 0 : i32
    return %c0_i32, %c0_i32_0 : i32, i32
  }
  func.func @transform_3(%arg0: i32, %arg1: i32, %arg2: i32) -> (i32, i32) {
    %c0_i32 = arith.constant 0 : i32
    %c0_i32_0 = arith.constant 0 : i32
    return %c0_i32, %arg2 : i32, i32
  }
  func.func @transform_4(%arg0: i32, %arg1: i32, %arg2: i32) -> (i32, i32) {
    %c0_i32 = arith.constant 0 : i32
    %c0_i32_0 = arith.constant 0 : i32
    return %c0_i32, %arg2 : i32, i32
  }
  func.func @transform_5(%arg0: i32, %arg1: i32, %arg2: i32) -> (i32, i32) {
    %0 = arith.muli %arg1, %arg2 : i32
    %c0_i32 = arith.constant 0 : i32
    return %arg0, %0 : i32, i32
  }
}

</mosaic_0001>

<bundles_post_ra>
// kernel: ngram_forward.1
= control target key start
LH: loop header
LB: loop body
LE: loop exit
PB: predicated region body
PF: predicated region fallthrough
CT: control target
= control target key end

     0   :  { %s815_s18 = smov 0   ;;  %s817_s19 = smov 0   ;;  %s906_s0 = inlined_call_operand.vmem [shape: bf16[16,32], index: 0, kind: input, shape index: {}]   ;;  %s907_s1 = inlined_call_operand.vmem [shape: bf16[32,128], index: 1, kind: input, shape index: {}]   ;;  %s908_s2 = inlined_call_operand.vmem [shape: f32[1,128], index: 2, kind: input, shape index: {}]   ;;  %s909_s3 = inlined_call_operand.vmem [shape: bf16[128,128], index: 3, kind: input, shape index: {}]   ;;  %s910_s4 = inlined_call_operand.vmem [shape: f32[1,128], index: 4, kind: input, shape index: {}]   ;;  %s911_s5 = inlined_call_operand.vmem [shape: f32[16,128], index: 5, kind: output, shape index: {}]  }
   0x1   :  { %s819_s20 = smov 0  }
   0x2 LB: > { %s30_s21 = sadd.s32 1, %s775_s19  ;;  %p637_p0 = scmp.ge.s32.totalorder %s779_s20, 1  ;;  %s779_s20 = sphi %s819_s20, %s15_s20   ;;  %s775_s19 = sphi %s817_s19, %s913_s19   ;;  %s771_s18 = sphi %s815_s18, %s912_s18  }
   0x3   : > { %p32_p1 = scmp.ge.s32.totalorder %s30_s21, 2  ;;  %p228_p2 = scmp.lt.s32.totalorder %s779_s20, 3 }
   0x5   : > { %s915_s21 = smov (%p32_p1, %s30_s21), 0  ;;  %p229_p3 = pnand %p637_p0, %p228_p2 }
   0x6   : > { %p292_p4 = scmp.eq.s32.totalorder (!%p229_p3), %s771_s18, 0 }
   0x7   : > { %232 = sbr.rel (%p229_p3) target bundleno = 844 (0x34c), region = 40 }
   0xc   : > { %297 = sbr.rel (!%p292_p4) target bundleno = 161 (0xa1), region = 44  ;;  %v697_v0 = vld [vmem:[%s907_s1 + $0x8] sm:$0xff] (%p292_p4)  ;;  %v696_v1 = vld [vmem:[%s907_s1] sm:$0xff] (%p292_p4)  ;;  %vm325_vm0 = vcmask (%p292_p4), 261120   ;;  %vm349_vm1 = vcmask (%p292_p4), 7168   ;;  %v781_v3 = vmov (%p292_p4), -inf  }
   0xd   : > { %335 = vmatpush.bf16.msra.mxu0 (%p292_p4), %v697_v0  ;;  %v695_v2 = vld [vmem:[%s906_s0] sm:$0xff] (%p292_p4)  ;;  %350 = vst.msk [vmem:[#allocation3] sm:$0xff] (%p292_p4), %vm349_vm1, %v781_v3  ;;  %v782_v4 = vmov (%p292_p4), 0.0  }
   0xe   : > { %351 = vst.msk [vmem:[#allocation3 + $0x8] sm:$0xff] (%p292_p4), %vm349_vm1, %v781_v3  ;;  %v740_v6 = vld [vmem:[%s908_s2] ss:$0 sm:$0xff] (%p292_p4) }
   0xf   : > { %352 = vst.msk [vmem:[#allocation4] sm:$0xff] (%p292_p4), %vm349_vm1, %v782_v4 }
  0x10   : > { %353 = vst.msk [vmem:[#allocation4 + $0x8] sm:$0xff] (%p292_p4), %vm349_vm1, %v782_v4 }
  0x11   : > { %336 = vmatpush.bf16.msra.mxu0 %v696_v1 }
  0x14   : > { %651 = vmatmul.msk.bf16.vlgmr.msra.gmra.mxu0 %vm325_vm0, %v695_v2 }
  0x91   : > { %v338_v5 = vpop.f32.mrf.mxu0 }
  0x92   : > { %v339_v7 = vadd.f32 %v740_v6, %v338_v5 }
  0x94   : > { %v343_v10 = vmax.f32 %v339_v7, 0.0 }
  0x99   : > { %v340_v8 = vpop.f32.mrf.mxu0 }
  0x9a   : > { %v341_v9 = vadd.f32 %v740_v6, %v340_v8 }
  0x9c   : > { %v344_v11 = vmax.f32 %v341_v9, 0.0 }
  0x9e   : > { %v710_v12 = vpack.c.bf16 %v344_v11, %v343_v10 }
  0xa0   : > { %711 = vst [vmem:[#allocation2] sm:$0xff] %v710_v12  }
  0xa1 PF: > { %v706_v13 = vld [vmem:[%s909_s3 + $0x38] sm:$0xff]  ;;  %v705_v14 = vld [vmem:[%s909_s3 + $0x30] sm:$0xff]  ;;  %v704_v15 = vld [vmem:[%s909_s3 + $0x28] sm:$0xff]  ;;  %p688_p5 = scmp.ne.s32.totalorder %s771_s18, 0 }
  0xa2   : > { %430 = vmatpush.bf16.msra.mxu0 %v706_v13  ;;  %v703_v16 = vld [vmem:[%s909_s3 + $0x20] sm:$0xff]  ;;  %v702_v17 = vld [vmem:[%s909_s3 + $0x18] sm:$0xff]  ;;  %v701_v18 = vld [vmem:[%s909_s3 + $0x10] sm:$0xff] }
  0xa3   : > { %v700_v19 = vld [vmem:[%s909_s3 + $0x8] sm:$0xff]  ;;  %v699_v20 = vld [vmem:[%s909_s3] sm:$0xff] }
  0xa4   : > { %v741_v22 = vld [vmem:[%s910_s4] ss:$0 sm:$0xff] }
  0xa6   : > { %431 = vmatpush.bf16.msra.mxu0 %v705_v14 }
  0xa7   : > { %v698_v21 = vld [vmem:[#allocation2] sm:$0xff] }
  0xaa   : > { %432 = vmatpush.bf16.msra.mxu0 %v704_v15 }
  0xae   : > { %433 = vmatpush.bf16.msra.mxu0 %v703_v16 }
  0xb2   : > { %434 = vmatpush.bf16.msra.mxu0 %v702_v17 }
  0xb6   : > { %435 = vmatpush.bf16.msra.mxu0 %v701_v18 }
  0xba   : > { %436 = vmatpush.bf16.msra.mxu0 %v700_v19 }
  0xbe   : > { %437 = vmatpush.bf16.msra.mxu0 %v699_v20 }
  0xc1   : > { %438 = vmatmul.bf16.vlgmr.msra.gmra.mxu0 %v698_v21 }
 0x13e   : > { %v439_v23 = vpop.f32.mrf.mxu0 }
 0x13f   : > { %v875_v24 = vadd.f32 %v741_v22, %v439_v23 }
 0x143   : > { %446 = sbr.rel (%p688_p5) target bundleno = 699 (0x2bb), region = 48 }
 0x146   : > { %v441_v25 = vpop.f32.mrf.mxu0 }
 0x147   : > { %v877_v26 = vadd.f32 %v741_v22, %v441_v25 }
 0x148   : > { %449 = vmax.xlane.f32.xlu0 %v875_v24  ;;  %v783_v27 = vmov 0   ;;  %v447_v28 = vld [vmem:[#allocation3] sm:$0xff]  ;;  %vm487_vm2 = vcmask 7168   ;;  %v448_v32 = vld [vmem:[#allocation3 + $0x8] sm:$0xff]  ;;  %v455_v47 = vld [vmem:[#allocation4] sm:$0xff] }
 0x149   : > { %742 = vset.pattern.permute.xlu1 %v783_v27  ;;  %743 = vset.pattern.permute.xlu0 %v783_v27  ;;  %v456_v52 = vld [vmem:[#allocation4 + $0x8] sm:$0xff] }
 0x150   : > { %451 = vmax.xlane.f32.xlu0 %v877_v26 }
 0x1bb   : > { %v450_v29 = vpop.xlane.xlu0 %449 }
 0x1bc   : > { %v453_v30 = vmax.f32 %v447_v28, %v450_v29 }
 0x1be   : > { %v457_v31 = vsub.f32 %v447_v28, %v453_v30  ;;  %490 = vst.msk [vmem:[#allocation3] sm:$0xff] %vm487_vm2, %v453_v30  ;;  %467 = vperm.xlu1 %742, %v453_v30  }
 0x1c0   : > { %v459_v44 = vmul.f32 1.442695, %v457_v31 }
 0x1c3   : > { %v452_v33 = vpop.xlane.xlu0 %451 }
 0x1c4   : > { %v454_v34 = vmax.f32 %v448_v32, %v452_v33 }
 0x1c6   : > { %v458_v35 = vsub.f32 %v448_v32, %v454_v34  ;;  %491 = vst.msk [vmem:[#allocation3 + $0x8] sm:$0xff] %vm487_vm2, %v454_v34  ;;  %472 = vperm.xlu1 %742, %v454_v34  }
 0x1c8   : > { %v461_v45 = vmul.f32 1.442695, %v458_v35 }
 0x230   : > { %v468_v36 = vpop.permute.xlu1 %467 }
 0x231   : > { %v475_v37 = vsub.f32 %v875_v24, %v468_v36 }
 0x233   : > { %v477_v38 = vmul.f32 1.442695, %v475_v37 }
 0x235   : > { %744 = vpow2.f32 %v477_v38 }
 0x238   : > { %v473_v39 = vpop.permute.xlu1 %472 }
 0x239   : > { %v476_v40 = vsub.f32 %v877_v26, %v473_v39 }
 0x23b   : > { %v745_v41 = vpop.eup %744  ;;  %v479_v42 = vmul.f32 1.442695, %v476_v40 }
 0x23c   : > { %481 = vadd.xlane.f32.xlu2 %v745_v41 }
 0x23d   : > { %746 = vpow2.f32 %v479_v42 }
 0x23e   : > { %748 = vpow2.f32 %v459_v44 }
 0x23f   : > { %750 = vpow2.f32 %v461_v45 }
 0x243   : > { %v747_v43 = vpop.eup %746 }
 0x244   : > { %483 = vadd.xlane.f32.xlu2 %v747_v43  ;;  %v749_v46 = vpop.eup %748 }
 0x245   : > { %v463_v48 = vmul.f32 %v749_v46, %v455_v47  ;;  %v751_v51 = vpop.eup %750 }
 0x246   : > { %v464_v53 = vmul.f32 %v751_v51, %v456_v52 }
 0x2af   : > { %v482_v49 = vpop.xlane.xlu2 %481 }
 0x2b0   : > { %v485_v50 = vadd.f32 %v482_v49, %v463_v48 }
 0x2b2   : > { %488 = vst.msk [vmem:[#allocation4] sm:$0xff] %vm487_vm2, %v485_v50 }
 0x2b7   : > { %v484_v54 = vpop.xlane.xlu2 %483 }
 0x2b8   : > { %v486_v55 = vadd.f32 %v484_v54, %v464_v53 }
 0x2ba   : > { %489 = vst.msk [vmem:[#allocation4 + $0x8] sm:$0xff] %vm487_vm2, %v486_v55 }
 0x2bb PF: > { %p689_p6 = scmp.ne.s32.totalorder %s771_s18, 1 }
 0x2bd   : > { %495 = sbr.rel (%p689_p6) target bundleno = 844 (0x34c), region = 52 }
 0x2c2   : > { %v498_v56 = vld [vmem:[#allocation4] sm:$0xff]  ;;  %v784_v57 = vmov 0   ;;  %v499_v58 = vld [vmem:[#allocation4 + $0x8] sm:$0xff]  ;;  %v496_v60 = vld [vmem:[#allocation3] sm:$0xff] }
 0x2c3   : > { %752 = vset.pattern.permute.xlu0 %v784_v57  ;;  %753 = vlog2.f32 %v498_v56  ;;  %v497_v1 = vld [vmem:[#allocation3 + $0x8] sm:$0xff] }
 0x2c4   : > { %755 = vlog2.f32 %v499_v58 }
 0x2c9   : > { %v754_v59 = vpop.eup %753 }
 0x2ca   : > { %v501_v61 = vmul.f32 0.6931472, %v754_v59  ;;  %v756_v62 = vpop.eup %755 }
 0x2cb   : > { %v503_v0 = vmul.f32 0.6931472, %v756_v62 }
 0x2cc   : > { %v504_v63 = vadd.f32 %v501_v61, %v496_v60 }
 0x2cd   : > { %v505_v2 = vadd.f32 %v503_v0, %v497_v1 }
 0x2ce   : > { %508 = vperm.xlu0 %752, %v504_v63  }
 0x2d6   : > { %513 = vperm.xlu0 %752, %v505_v2  }
 0x340   : > { %v509_v3 = vpop.permute.xlu0 %508 }
 0x341   : > { %v516_v4 = vsub.f32 %v875_v24, %v509_v3 }
 0x343   : > { %518 = vst [vmem:[%s911_s5] sm:$0xff] %v516_v4 }
 0x348   : > { %v514_v5 = vpop.permute.xlu0 %513 }
 0x349   : > { %v517_v6 = vsub.f32 %v877_v26, %v514_v5 }
 0x34b   : > { %519 = vst [vmem:[%s911_s5 + $0x8] sm:$0xff] %v517_v6 }
 0x34c PF: > { %s15_s20 = sadd.s32 1, %s779_s20   ;;  %s912_s18 = smov %s775_s19 }
 0x34d   : > { %p12_p7 = scmp.ge.s32.totalorder %s15_s20, 4   ;;  %s913_s19 = smov %s915_s21 }
 0x34f   :  { %14 = sbr.rel (!%p12_p7) target bundleno = 2 (0x2), region = 88 }

</bundles_post_ra>
